<compile_context>
chip_gen: v7x
topology: tpu7x:2x2x1
jax: 0.10.0
libtpu: 0.0.40
codegen_flags: <defaults>
</compile_context>

<pallas_src>
import functools

import jax
import jax.numpy as jnp
from jax.experimental import pallas as pl
from jax.experimental.pallas import tpu as pltpu


def lstm_kernel(x_ref, gpk_ref, hpk_ref, o_ref, *, B, T):
    TB, Ipad = x_ref.shape
    H4 = gpk_ref.shape[1]
    H = H4 // 4
    H3 = 3 * H

    pk = gpk_ref[...]
    wproj = pk[:Ipad, :]          # (Ipad, 4H): W_ih^T rows, bias row, zero pad (aligned slice)
    whh = pk[Ipad:Ipad + H, :]    # (H, 4H)                                     (aligned slice)

    # ---- hoisted input projection: all timesteps + bias in ONE matmul ----
    # x_ref is time-major (T*B, Ipad) with a ones column, so the bias row of
    # wproj is folded in by the matmul.  gx is independent of h/c -> off the
    # serial dependency chain.
    gx = jnp.dot(x_ref[...], wproj, preferred_element_type=jnp.float32)  # (T*B, 4H)

    h = jnp.zeros((B, H), jnp.float32)
    c = jnp.zeros((B, H), jnp.float32)

    # ---- recurrence: only h @ W_hh^T + elementwise on the serial chain ----
    # Static unroll: T is small and known at trace time (for large T, stage gx in
    # VMEM scratch and use lax.fori_loop to bound vreg live ranges).
    for t in range(T):
        gates = gx[t * B:(t + 1) * B, :] + jnp.dot(
            h, whh, preferred_element_type=jnp.float32)       # (B, 4H)
        sig = jax.nn.sigmoid(gates[:, :H3])                   # [ i | f | o ] one EUP launch
        g_g = jnp.tanh(gates[:, H3:])                          # g, one EUP launch
        i_g = sig[:, :H]
        f_g = sig[:, H:2 * H]
        o_g = sig[:, 2 * H:H3]
        c = f_g * c + i_g * g_g
        h = o_g * jnp.tanh(c)

    # Final linear head on the last timestep's hidden state.
    hp = hpk_ref[...]
    o_ref[...] = (jnp.dot(h, hp[:H, :], preferred_element_type=jnp.float32)
                  + hp[H:H + 1, :]).astype(o_ref.dtype)


def _reorder_gates(w):
    """Reorder PyTorch's [i, f, g, o] gate blocks (along axis 0) to [i, f, o, g]."""
    i, f, g, o = jnp.split(w, 4, axis=0)
    return jnp.concatenate([i, f, o, g], axis=0)


def prepare_params(w_ih, w_hh, b_ih, b_hh, w_out, b_out):
    """One-time weight prep (call once when weights are loaded, NOT per forward).

    Returns:
      gates_pack: (Ipad + H, 4H) f32 — [W_ih^T | bias | zero-pad] stacked over W_hh^T,
                  gate columns reordered to [i, f, o, g], first block padded to a
                  multiple of 8 rows so in-kernel slices are sublane-aligned.
      head_pack:  (H + 1, O) f32 — W_out^T stacked over b_out.
    """
    H = w_hh.shape[1]
    I = w_ih.shape[1]
    O = w_out.shape[0]
    Ipad = ((I + 1 + 7) // 8) * 8            # weight rows + bias row, 8-row aligned

    wih_t = jnp.transpose(_reorder_gates(w_ih)).astype(jnp.float32)   # (I, 4H)
    whh_t = jnp.transpose(_reorder_gates(w_hh)).astype(jnp.float32)   # (H, 4H)
    bias = _reorder_gates(b_ih + b_hh).astype(jnp.float32)            # (4H,)

    proj = jnp.zeros((Ipad, 4 * H), jnp.float32)
    proj = proj.at[:I, :].set(wih_t).at[I, :].set(bias)
    gates_pack = jnp.concatenate([proj, whh_t], axis=0)               # (Ipad + H, 4H)

    head_pack = jnp.concatenate(
        [jnp.transpose(w_out).astype(jnp.float32),
         b_out.reshape(1, O).astype(jnp.float32)], axis=0)            # (H + 1, O)
    return gates_pack, head_pack


@jax.jit
def windowed_lstm_forward(x, gates_pack, head_pack):
    """x: (B, T, I) batch-first, like the PyTorch module. Packs from prepare_params."""
    B, T, I = x.shape
    H4 = gates_pack.shape[1]
    H = H4 // 4
    Ipad = gates_pack.shape[0] - H
    O = head_pack.shape[1]

    # Time-major flatten + ones column (picks up the folded bias) + zero pad.
    x_tm = jnp.transpose(x.astype(jnp.float32), (1, 0, 2)).reshape(T * B, I)
    ones = jnp.ones((T * B, 1), jnp.float32)
    zpad = jnp.zeros((T * B, Ipad - I - 1), jnp.float32)
    x2d = jnp.concatenate([x_tm, ones, zpad], axis=1)                 # (T*B, Ipad)

    kernel = functools.partial(lstm_kernel, B=B, T=T)
    return pl.pallas_call(
        kernel,
        out_shape=jax.ShapeDtypeStruct((B, O), jnp.float32),
        # No grid: single invocation, whole arrays resident in VMEM, no
        # pointless double-buffering.  (For realistic B on v7x, add a
        # batch-tile "parallel" grid axis to use both TensorCores.)
        in_specs=[
            pl.BlockSpec(memory_space=pltpu.MemorySpace.VMEM),   # x (time-major, padded)
            pl.BlockSpec(memory_space=pltpu.MemorySpace.VMEM),   # gates_pack
            pl.BlockSpec(memory_space=pltpu.MemorySpace.VMEM),   # head_pack
        ],
        out_specs=pl.BlockSpec(memory_space=pltpu.MemorySpace.VMEM),
    )(x2d, gates_pack, head_pack)


def windowed_lstm_reference(x, w_ih, w_hh, b_ih, b_hh, w_out, b_out):
    """Pure-JAX reference mirroring torch.nn.LSTM (batch_first) + Linear semantics."""
    B, T, I = x.shape
    H = w_hh.shape[1]

    def step(carry, x_t):
        h, c = carry
        gates = x_t @ w_ih.T + b_ih + h @ w_hh.T + b_hh
        i = jax.nn.sigmoid(gates[:, 0:H])
        f = jax.nn.sigmoid(gates[:, H:2 * H])
        g = jnp.tanh(gates[:, 2 * H:3 * H])
        o = jax.nn.sigmoid(gates[:, 3 * H:4 * H])
        c = f * c + i * g
        h = o * jnp.tanh(c)
        return (h, c), None

    h0 = jnp.zeros((B, H), jnp.float32)
    c0 = jnp.zeros((B, H), jnp.float32)
    (h_last, _), _ = jax.lax.scan(step, (h0, c0), jnp.transpose(x, (1, 0, 2)))
    return h_last @ w_out.T + b_out


if __name__ == "__main__":
    # Small shapes consistent with the module's forward:
    # input (batch=2, seq=8, input_size=6); hidden_size=32; out_size=4.
    B, T, I, H, O = 2, 8, 6, 32, 4

    key = jax.random.PRNGKey(0)
    ks = jax.random.split(key, 8)
    bound = 1.0 / jnp.sqrt(H)  # PyTorch nn.LSTM / nn.Linear uniform init bound

    x = jax.random.normal(ks[0], (B, T, I), jnp.float32)
    w_ih = jax.random.uniform(ks[1], (4 * H, I), jnp.float32, -bound, bound)
    w_hh = jax.random.uniform(ks[2], (4 * H, H), jnp.float32, -bound, bound)
    b_ih = jax.random.uniform(ks[3], (4 * H,), jnp.float32, -bound, bound)
    b_hh = jax.random.uniform(ks[4], (4 * H,), jnp.float32, -bound, bound)
    w_out = jax.random.uniform(ks[5], (O, H), jnp.float32, -bound, bound)
    b_out = jax.random.uniform(ks[6], (O,), jnp.float32, -bound, bound)

    # One-time weight prep (off the per-call path).
    gates_pack, head_pack = prepare_params(w_ih, w_hh, b_ih, b_hh, w_out, b_out)
    gates_pack, head_pack = jax.block_until_ready((gates_pack, head_pack))

    out = windowed_lstm_forward(x, gates_pack, head_pack)
    out = jax.block_until_ready(out)

    ref = windowed_lstm_reference(x, w_ih, w_hh, b_ih, b_hh, w_out, b_out)
    assert out.shape == (B, O)
    assert jnp.allclose(out, ref, atol=1e-5, rtol=1e-5), (out, ref)

    print("KERNEL_OK")
</pallas_src>

<mosaic_0001>
module attributes {stable_mosaic.version = 11 : i64} {
  func.func @lstm_kernel(%arg0: memref<16x8xf32, #tpu.memory_space<vmem>>, %arg1: memref<40x128xf32, #tpu.memory_space<vmem>>, %arg2: memref<33x4xf32, #tpu.memory_space<vmem>>, %arg3: memref<2x4xf32, #tpu.memory_space<vmem>>) attributes {dimension_semantics = [], scalar_prefetch = 0 : i64, scratch_operands = 0 : i64, tpu.core_type = #tpu.core_type<tc>} {
    %c0 = arith.constant 0 : index
    %c0_0 = arith.constant 0 : index
    %0 = vector.load %arg1[%c0, %c0_0] : memref<40x128xf32, #tpu.memory_space<vmem>>, vector<40x128xf32>
    %1 = vector.extract_strided_slice %0 {offsets = [0, 0], sizes = [8, 128], strides = [1, 1]} : vector<40x128xf32> to vector<8x128xf32>
    %2 = vector.extract_strided_slice %0 {offsets = [8, 0], sizes = [32, 128], strides = [1, 1]} : vector<40x128xf32> to vector<32x128xf32>
    %c0_1 = arith.constant 0 : index
    %c0_2 = arith.constant 0 : index
    %3 = vector.load %arg0[%c0_1, %c0_2] : memref<16x8xf32, #tpu.memory_space<vmem>>, vector<16x8xf32>
    %cst = arith.constant dense<0.000000e+00> : vector<16x128xf32>
    %4 = tpu.matmul %3, %1, %cst {dimension_numbers = #tpu.dot_dimension_numbers<[1], [0], [0], [1], [0, 0, 1, 1], [], []>} : vector<16x8xf32>, vector<8x128xf32>, vector<16x128xf32> -> vector<16x128xf32>
    %cst_3 = arith.constant 0.000000e+00 : f32
    %5 = vector.broadcast %cst_3 : f32 to vector<2x32xf32>
    %cst_4 = arith.constant 0.000000e+00 : f32
    %6 = vector.broadcast %cst_4 : f32 to vector<2x32xf32>
    %7 = vector.extract_strided_slice %4 {offsets = [0, 0], sizes = [2, 128], strides = [1, 1]} : vector<16x128xf32> to vector<2x128xf32>
    %cst_5 = arith.constant dense<0.000000e+00> : vector<2x128xf32>
    %8 = tpu.matmul %5, %2, %cst_5 {dimension_numbers = #tpu.dot_dimension_numbers<[1], [0], [0], [1], [0, 0, 1, 1], [], []>} : vector<2x32xf32>, vector<32x128xf32>, vector<2x128xf32> -> vector<2x128xf32>
    %9 = arith.addf %7, %8 : vector<2x128xf32>
    %10 = vector.extract_strided_slice %9 {offsets = [0, 0], sizes = [2, 96], strides = [1, 1]} : vector<2x128xf32> to vector<2x96xf32>
    %11 = arith.negf %10 : vector<2x96xf32>
    %12 = math.exp %11 : vector<2x96xf32>
    %cst_6 = arith.constant 1.000000e+00 : f32
    %13 = vector.broadcast %cst_6 : f32 to vector<2x96xf32>
    %14 = arith.addf %13, %12 : vector<2x96xf32>
    %15 = arith.divf %13, %14 : vector<2x96xf32>
    %16 = vector.extract_strided_slice %9 {offsets = [0, 96], sizes = [2, 32], strides = [1, 1]} : vector<2x128xf32> to vector<2x32xf32>
    %17 = math.tanh %16 : vector<2x32xf32>
    %18 = vector.extract_strided_slice %15 {offsets = [0, 0], sizes = [2, 32], strides = [1, 1]} : vector<2x96xf32> to vector<2x32xf32>
    %19 = vector.extract_strided_slice %15 {offsets = [0, 32], sizes = [2, 32], strides = [1, 1]} : vector<2x96xf32> to vector<2x32xf32>
    %20 = vector.extract_strided_slice %15 {offsets = [0, 64], sizes = [2, 32], strides = [1, 1]} : vector<2x96xf32> to vector<2x32xf32>
    %21 = arith.mulf %19, %6 : vector<2x32xf32>
    %22 = arith.mulf %18, %17 : vector<2x32xf32>
    %23 = arith.addf %21, %22 : vector<2x32xf32>
    %24 = math.tanh %23 : vector<2x32xf32>
    %25 = arith.mulf %20, %24 : vector<2x32xf32>
    %26 = vector.extract_strided_slice %4 {offsets = [2, 0], sizes = [2, 128], strides = [1, 1]} : vector<16x128xf32> to vector<2x128xf32>
    %cst_7 = arith.constant dense<0.000000e+00> : vector<2x128xf32>
    %27 = tpu.matmul %25, %2, %cst_7 {dimension_numbers = #tpu.dot_dimension_numbers<[1], [0], [0], [1], [0, 0, 1, 1], [], []>} : vector<2x32xf32>, vector<32x128xf32>, vector<2x128xf32> -> vector<2x128xf32>
    %28 = arith.addf %26, %27 : vector<2x128xf32>
    %29 = vector.extract_strided_slice %28 {offsets = [0, 0], sizes = [2, 96], strides = [1, 1]} : vector<2x128xf32> to vector<2x96xf32>
    %30 = arith.negf %29 : vector<2x96xf32>
    %31 = math.exp %30 : vector<2x96xf32>
    %cst_8 = arith.constant 1.000000e+00 : f32
    %32 = vector.broadcast %cst_8 : f32 to vector<2x96xf32>
    %33 = arith.addf %32, %31 : vector<2x96xf32>
    %34 = arith.divf %32, %33 : vector<2x96xf32>
    %35 = vector.extract_strided_slice %28 {offsets = [0, 96], sizes = [2, 32], strides = [1, 1]} : vector<2x128xf32> to vector<2x32xf32>
    %36 = math.tanh %35 : vector<2x32xf32>
    %37 = vector.extract_strided_slice %34 {offsets = [0, 0], sizes = [2, 32], strides = [1, 1]} : vector<2x96xf32> to vector<2x32xf32>
    %38 = vector.extract_strided_slice %34 {offsets = [0, 32], sizes = [2, 32], strides = [1, 1]} : vector<2x96xf32> to vector<2x32xf32>
    %39 = vector.extract_strided_slice %34 {offsets = [0, 64], sizes = [2, 32], strides = [1, 1]} : vector<2x96xf32> to vector<2x32xf32>
    %40 = arith.mulf %38, %23 : vector<2x32xf32>
    %41 = arith.mulf %37, %36 : vector<2x32xf32>
    %42 = arith.addf %40, %41 : vector<2x32xf32>
    %43 = math.tanh %42 : vector<2x32xf32>
    %44 = arith.mulf %39, %43 : vector<2x32xf32>
    %45 = vector.extract_strided_slice %4 {offsets = [4, 0], sizes = [2, 128], strides = [1, 1]} : vector<16x128xf32> to vector<2x128xf32>
    %cst_9 = arith.constant dense<0.000000e+00> : vector<2x128xf32>
    %46 = tpu.matmul %44, %2, %cst_9 {dimension_numbers = #tpu.dot_dimension_numbers<[1], [0], [0], [1], [0, 0, 1, 1], [], []>} : vector<2x32xf32>, vector<32x128xf32>, vector<2x128xf32> -> vector<2x128xf32>
    %47 = arith.addf %45, %46 : vector<2x128xf32>
    %48 = vector.extract_strided_slice %47 {offsets = [0, 0], sizes = [2, 96], strides = [1, 1]} : vector<2x128xf32> to vector<2x96xf32>
    %49 = arith.negf %48 : vector<2x96xf32>
    %50 = math.exp %49 : vector<2x96xf32>
    %cst_10 = arith.constant 1.000000e+00 : f32
    %51 = vector.broadcast %cst_10 : f32 to vector<2x96xf32>
    %52 = arith.addf %51, %50 : vector<2x96xf32>
    %53 = arith.divf %51, %52 : vector<2x96xf32>
    %54 = vector.extract_strided_slice %47 {offsets = [0, 96], sizes = [2, 32], strides = [1, 1]} : vector<2x128xf32> to vector<2x32xf32>
    %55 = math.tanh %54 : vector<2x32xf32>
    %56 = vector.extract_strided_slice %53 {offsets = [0, 0], sizes = [2, 32], strides = [1, 1]} : vector<2x96xf32> to vector<2x32xf32>
    %57 = vector.extract_strided_slice %53 {offsets = [0, 32], sizes = [2, 32], strides = [1, 1]} : vector<2x96xf32> to vector<2x32xf32>
    %58 = vector.extract_strided_slice %53 {offsets = [0, 64], sizes = [2, 32], strides = [1, 1]} : vector<2x96xf32> to vector<2x32xf32>
    %59 = arith.mulf %57, %42 : vector<2x32xf32>
    %60 = arith.mulf %56, %55 : vector<2x32xf32>
    %61 = arith.addf %59, %60 : vector<2x32xf32>
    %62 = math.tanh %61 : vector<2x32xf32>
    %63 = arith.mulf %58, %62 : vector<2x32xf32>
    %64 = vector.extract_strided_slice %4 {offsets = [6, 0], sizes = [2, 128], strides = [1, 1]} : vector<16x128xf32> to vector<2x128xf32>
    %cst_11 = arith.constant dense<0.000000e+00> : vector<2x128xf32>
    %65 = tpu.matmul %63, %2, %cst_11 {dimension_numbers = #tpu.dot_dimension_numbers<[1], [0], [0], [1], [0, 0, 1, 1], [], []>} : vector<2x32xf32>, vector<32x128xf32>, vector<2x128xf32> -> vector<2x128xf32>
    %66 = arith.addf %64, %65 : vector<2x128xf32>
    %67 = vector.extract_strided_slice %66 {offsets = [0, 0], sizes = [2, 96], strides = [1, 1]} : vector<2x128xf32> to vector<2x96xf32>
    %68 = arith.negf %67 : vector<2x96xf32>
    %69 = math.exp %68 : vector<2x96xf32>
    %cst_12 = arith.constant 1.000000e+00 : f32
    %70 = vector.broadcast %cst_12 : f32 to vector<2x96xf32>
    %71 = arith.addf %70, %69 : vector<2x96xf32>
    %72 = arith.divf %70, %71 : vector<2x96xf32>
    %73 = vector.extract_strided_slice %66 {offsets = [0, 96], sizes = [2, 32], strides = [1, 1]} : vector<2x128xf32> to vector<2x32xf32>
    %74 = math.tanh %73 : vector<2x32xf32>
    %75 = vector.extract_strided_slice %72 {offsets = [0, 0], sizes = [2, 32], strides = [1, 1]} : vector<2x96xf32> to vector<2x32xf32>
    %76 = vector.extract_strided_slice %72 {offsets = [0, 32], sizes = [2, 32], strides = [1, 1]} : vector<2x96xf32> to vector<2x32xf32>
    %77 = vector.extract_strided_slice %72 {offsets = [0, 64], sizes = [2, 32], strides = [1, 1]} : vector<2x96xf32> to vector<2x32xf32>
    %78 = arith.mulf %76, %61 : vector<2x32xf32>
    %79 = arith.mulf %75, %74 : vector<2x32xf32>
    %80 = arith.addf %78, %79 : vector<2x32xf32>
    %81 = math.tanh %80 : vector<2x32xf32>
    %82 = arith.mulf %77, %81 : vector<2x32xf32>
    %83 = vector.extract_strided_slice %4 {offsets = [8, 0], sizes = [2, 128], strides = [1, 1]} : vector<16x128xf32> to vector<2x128xf32>
    %cst_13 = arith.constant dense<0.000000e+00> : vector<2x128xf32>
    %84 = tpu.matmul %82, %2, %cst_13 {dimension_numbers = #tpu.dot_dimension_numbers<[1], [0], [0], [1], [0, 0, 1, 1], [], []>} : vector<2x32xf32>, vector<32x128xf32>, vector<2x128xf32> -> vector<2x128xf32>
    %85 = arith.addf %83, %84 : vector<2x128xf32>
    %86 = vector.extract_strided_slice %85 {offsets = [0, 0], sizes = [2, 96], strides = [1, 1]} : vector<2x128xf32> to vector<2x96xf32>
    %87 = arith.negf %86 : vector<2x96xf32>
    %88 = math.exp %87 : vector<2x96xf32>
    %cst_14 = arith.constant 1.000000e+00 : f32
    %89 = vector.broadcast %cst_14 : f32 to vector<2x96xf32>
    %90 = arith.addf %89, %88 : vector<2x96xf32>
    %91 = arith.divf %89, %90 : vector<2x96xf32>
    %92 = vector.extract_strided_slice %85 {offsets = [0, 96], sizes = [2, 32], strides = [1, 1]} : vector<2x128xf32> to vector<2x32xf32>
    %93 = math.tanh %92 : vector<2x32xf32>
    %94 = vector.extract_strided_slice %91 {offsets = [0, 0], sizes = [2, 32], strides = [1, 1]} : vector<2x96xf32> to vector<2x32xf32>
    %95 = vector.extract_strided_slice %91 {offsets = [0, 32], sizes = [2, 32], strides = [1, 1]} : vector<2x96xf32> to vector<2x32xf32>
    %96 = vector.extract_strided_slice %91 {offsets = [0, 64], sizes = [2, 32], strides = [1, 1]} : vector<2x96xf32> to vector<2x32xf32>
    %97 = arith.mulf %95, %80 : vector<2x32xf32>
    %98 = arith.mulf %94, %93 : vector<2x32xf32>
    %99 = arith.addf %97, %98 : vector<2x32xf32>
    %100 = math.tanh %99 : vector<2x32xf32>
    %101 = arith.mulf %96, %100 : vector<2x32xf32>
    %102 = vector.extract_strided_slice %4 {offsets = [10, 0], sizes = [2, 128], strides = [1, 1]} : vector<16x128xf32> to vector<2x128xf32>
    %cst_15 = arith.constant dense<0.000000e+00> : vector<2x128xf32>
    %103 = tpu.matmul %101, %2, %cst_15 {dimension_numbers = #tpu.dot_dimension_numbers<[1], [0], [0], [1], [0, 0, 1, 1], [], []>} : vector<2x32xf32>, vector<32x128xf32>, vector<2x128xf32> -> vector<2x128xf32>
    %104 = arith.addf %102, %103 : vector<2x128xf32>
    %105 = vector.extract_strided_slice %104 {offsets = [0, 0], sizes = [2, 96], strides = [1, 1]} : vector<2x128xf32> to vector<2x96xf32>
    %106 = arith.negf %105 : vector<2x96xf32>
    %107 = math.exp %106 : vector<2x96xf32>
    %cst_16 = arith.constant 1.000000e+00 : f32
    %108 = vector.broadcast %cst_16 : f32 to vector<2x96xf32>
    %109 = arith.addf %108, %107 : vector<2x96xf32>
    %110 = arith.divf %108, %109 : vector<2x96xf32>
    %111 = vector.extract_strided_slice %104 {offsets = [0, 96], sizes = [2, 32], strides = [1, 1]} : vector<2x128xf32> to vector<2x32xf32>
    %112 = math.tanh %111 : vector<2x32xf32>
    %113 = vector.extract_strided_slice %110 {offsets = [0, 0], sizes = [2, 32], strides = [1, 1]} : vector<2x96xf32> to vector<2x32xf32>
    %114 = vector.extract_strided_slice %110 {offsets = [0, 32], sizes = [2, 32], strides = [1, 1]} : vector<2x96xf32> to vector<2x32xf32>
    %115 = vector.extract_strided_slice %110 {offsets = [0, 64], sizes = [2, 32], strides = [1, 1]} : vector<2x96xf32> to vector<2x32xf32>
    %116 = arith.mulf %114, %99 : vector<2x32xf32>
    %117 = arith.mulf %113, %112 : vector<2x32xf32>
    %118 = arith.addf %116, %117 : vector<2x32xf32>
    %119 = math.tanh %118 : vector<2x32xf32>
    %120 = arith.mulf %115, %119 : vector<2x32xf32>
    %121 = vector.extract_strided_slice %4 {offsets = [12, 0], sizes = [2, 128], strides = [1, 1]} : vector<16x128xf32> to vector<2x128xf32>
    %cst_17 = arith.constant dense<0.000000e+00> : vector<2x128xf32>
    %122 = tpu.matmul %120, %2, %cst_17 {dimension_numbers = #tpu.dot_dimension_numbers<[1], [0], [0], [1], [0, 0, 1, 1], [], []>} : vector<2x32xf32>, vector<32x128xf32>, vector<2x128xf32> -> vector<2x128xf32>
    %123 = arith.addf %121, %122 : vector<2x128xf32>
    %124 = vector.extract_strided_slice %123 {offsets = [0, 0], sizes = [2, 96], strides = [1, 1]} : vector<2x128xf32> to vector<2x96xf32>
    %125 = arith.negf %124 : vector<2x96xf32>
    %126 = math.exp %125 : vector<2x96xf32>
    %cst_18 = arith.constant 1.000000e+00 : f32
    %127 = vector.broadcast %cst_18 : f32 to vector<2x96xf32>
    %128 = arith.addf %127, %126 : vector<2x96xf32>
    %129 = arith.divf %127, %128 : vector<2x96xf32>
    %130 = vector.extract_strided_slice %123 {offsets = [0, 96], sizes = [2, 32], strides = [1, 1]} : vector<2x128xf32> to vector<2x32xf32>
    %131 = math.tanh %130 : vector<2x32xf32>
    %132 = vector.extract_strided_slice %129 {offsets = [0, 0], sizes = [2, 32], strides = [1, 1]} : vector<2x96xf32> to vector<2x32xf32>
    %133 = vector.extract_strided_slice %129 {offsets = [0, 32], sizes = [2, 32], strides = [1, 1]} : vector<2x96xf32> to vector<2x32xf32>
    %134 = vector.extract_strided_slice %129 {offsets = [0, 64], sizes = [2, 32], strides = [1, 1]} : vector<2x96xf32> to vector<2x32xf32>
    %135 = arith.mulf %133, %118 : vector<2x32xf32>
    %136 = arith.mulf %132, %131 : vector<2x32xf32>
    %137 = arith.addf %135, %136 : vector<2x32xf32>
    %138 = math.tanh %137 : vector<2x32xf32>
    %139 = arith.mulf %134, %138 : vector<2x32xf32>
    %140 = vector.extract_strided_slice %4 {offsets = [14, 0], sizes = [2, 128], strides = [1, 1]} : vector<16x128xf32> to vector<2x128xf32>
    %cst_19 = arith.constant dense<0.000000e+00> : vector<2x128xf32>
    %141 = tpu.matmul %139, %2, %cst_19 {dimension_numbers = #tpu.dot_dimension_numbers<[1], [0], [0], [1], [0, 0, 1, 1], [], []>} : vector<2x32xf32>, vector<32x128xf32>, vector<2x128xf32> -> vector<2x128xf32>
    %142 = arith.addf %140, %141 : vector<2x128xf32>
    %143 = vector.extract_strided_slice %142 {offsets = [0, 0], sizes = [2, 96], strides = [1, 1]} : vector<2x128xf32> to vector<2x96xf32>
    %144 = arith.negf %143 : vector<2x96xf32>
    %145 = math.exp %144 : vector<2x96xf32>
    %cst_20 = arith.constant 1.000000e+00 : f32
    %146 = vector.broadcast %cst_20 : f32 to vector<2x96xf32>
    %147 = arith.addf %146, %145 : vector<2x96xf32>
    %148 = arith.divf %146, %147 : vector<2x96xf32>
    %149 = vector.extract_strided_slice %142 {offsets = [0, 96], sizes = [2, 32], strides = [1, 1]} : vector<2x128xf32> to vector<2x32xf32>
    %150 = math.tanh %149 : vector<2x32xf32>
    %151 = vector.extract_strided_slice %148 {offsets = [0, 0], sizes = [2, 32], strides = [1, 1]} : vector<2x96xf32> to vector<2x32xf32>
    %152 = vector.extract_strided_slice %148 {offsets = [0, 32], sizes = [2, 32], strides = [1, 1]} : vector<2x96xf32> to vector<2x32xf32>
    %153 = vector.extract_strided_slice %148 {offsets = [0, 64], sizes = [2, 32], strides = [1, 1]} : vector<2x96xf32> to vector<2x32xf32>
    %154 = arith.mulf %152, %137 : vector<2x32xf32>
    %155 = arith.mulf %151, %150 : vector<2x32xf32>
    %156 = arith.addf %154, %155 : vector<2x32xf32>
    %157 = math.tanh %156 : vector<2x32xf32>
    %158 = arith.mulf %153, %157 : vector<2x32xf32>
    %c0_21 = arith.constant 0 : index
    %c0_22 = arith.constant 0 : index
    %159 = vector.load %arg2[%c0_21, %c0_22] : memref<33x4xf32, #tpu.memory_space<vmem>>, vector<33x4xf32>
    %160 = vector.extract_strided_slice %159 {offsets = [0, 0], sizes = [32, 4], strides = [1, 1]} : vector<33x4xf32> to vector<32x4xf32>
    %cst_23 = arith.constant dense<0.000000e+00> : vector<2x4xf32>
    %161 = tpu.matmul %158, %160, %cst_23 {dimension_numbers = #tpu.dot_dimension_numbers<[1], [0], [0], [1], [0, 0, 1, 1], [], []>} : vector<2x32xf32>, vector<32x4xf32>, vector<2x4xf32> -> vector<2x4xf32>
    %162 = vector.extract_strided_slice %159 {offsets = [32, 0], sizes = [1, 4], strides = [1, 1]} : vector<33x4xf32> to vector<1x4xf32>
    %163 = vector.broadcast %162 : vector<1x4xf32> to vector<2x4xf32>
    %164 = arith.addf %161, %163 : vector<2x4xf32>
    %c0_24 = arith.constant 0 : index
    %c0_25 = arith.constant 0 : index
    %165 = vector.load %arg3[%c0_24, %c0_25] : memref<2x4xf32, #tpu.memory_space<vmem>>, vector<2x4xf32>
    tpu.vector_store %arg3[%c0_24, %c0_25], %164 {strides = array<i32>} : memref<2x4xf32, #tpu.memory_space<vmem>>, vector<2x4xf32>,
    return
  }
}

</mosaic_0001>

<bundles_post_ra>
// kernel: windowed_lstm_forward.1
= control target key start
LH: loop header
LB: loop body
LE: loop exit
PB: predicated region body
PF: predicated region fallthrough
CT: control target
= control target key end

     0   :  { %vm22_vm0 = vcmask 64512   ;;  %v1367_v3 = vmov 0.0|0.0   ;;  %s1550_s0 = inlined_call_operand.vmem [shape: f32[16,8], index: 0, kind: input, shape index: {}]   ;;  %s1551_s1 = inlined_call_operand.vmem [shape: f32[40,128], index: 1, kind: input, shape index: {}]   ;;  %s1552_s2 = inlined_call_operand.vmem [shape: f32[33,4], index: 2, kind: input, shape index: {}]   ;;  %s1553_s3 = inlined_call_operand.hbm [shape: f32[2,4], index: 3, kind: output, shape index: {}]  }
   0x1   :  { %v16_v0 = vld [vmem:[%s1551_s1 + $0x8] sm:$0xff]  ;;  %v17_v1 = vld [vmem:[%s1551_s1 + $0x10] sm:$0xff]  ;;  %v15_v2 = vld [vmem:[%s1551_s1] sm:$0xff]  ;;  %1219 = vmatprep.subr.bf16.mxu1 %v1367_v3 }
   0x2   :  { %v1403_v4 = vpack.c.bf16 %v17_v1, %v16_v0  ;;  %1115 = vmatprep.subr.mxu0 %v15_v2  ;;  %v20_v5 = vld [vmem:[%s1550_s0] sm:$0xff]  ;;  %v18_v6 = vld [vmem:[%s1551_s1 + $0x18] sm:$0xff]  ;;  %v21_v8 = vld [vmem:[%s1550_s0 + $0x8] sm:$0xff] }
   0x3   :  { %v19_v7 = vld [vmem:[%s1551_s1 + $0x20] sm:$0xff]  ;;  %1116 = vmatpush3.msra.mxu0 %v15_v2  ;;  %1117 = vmatprep.mubr.msk.f32.mxu0 %vm22_vm0, %v20_v5 }
   0x4   :  { %8 = vsyncpa [#allocation3], 0  ;;  %1221 = vmatpush3.bf16.msra.mxu1 %v1403_v4  ;;  %v1418_v9 = vpack.c.bf16 %v19_v7, %v18_v6  ;;  %1118 = vmatmul.mubr.msk.f32.vlgmr.msra.gmra.mrb[0].mxu0 %vm22_vm0, %v21_v8  ;;  %vm1368_vm1 = vmmov 0   ;;  %v1369_v10 = vmov 0.0   ;;  %s1370_s0 = smov 32   ;;  %s1371_s1 = smov 64  }
   0x5   :  { %1222 = vmatprep.subr.bf16.mxu1 %v1367_v3  ;;  %1128 = vmatprep.mubr.msk.f32.mxu1 %vm1368_vm1, %v1369_v10  ;;  %vm104_vm2 = vcmask 261120   ;;  %s1372_s9 = smov [#allocation2]   ;;  %vm1032_vm3 = vcmask 25600  }
   0x6   :  { %1225 = vmatprep.subr.bf16.mxu0 %v1367_v3  ;;  %1139 = vmatprep.mubr.msk.f32.mxu0 %vm1368_vm1, %v1369_v10  ;;  %s1040_s10 = sshll.u32 %s1372_s9, 4  ;;  %s1041_s10 = int_to_ptr.vmem [resolvable:$true] %s1040_s10 }
   0x7   :  { %1227 = vmatpush3.bf16.msra.mxu0 %v1403_v4  ;;  %s1343_s11 = scalar_lea.vmem %s1041_s10, 32  ;;  %p1348_p1 = scmp.lt.s32.totalorder %s1041_s10, %s1041_s10 }
   0x8   :  { %1224 = vmatpush3.bf16.msra.mxu1 %v1418_v9  ;;  %1228 = vmatprep.subr.bf16.mxu0 %v1367_v3  ;;  %p1344_p0 = scmp.ne.s32.totalorder %s1041_s10, %s1343_s11  ;;  %p1349_p2 = scmp.lt.s32.totalorder %s1343_s11, %s1343_s11 }
   0x9   :  { %1231 = vmatprep.subr.bf16.mxu1 %v1367_v3 }
   0xa   :  { %p1350_p3 = por %p1349_p2, %p1348_p1 }
   0xb   :  { %1129 = vmatmul.mubr.f32.vlgmr.msra.gmra.mrb[0].mxu1 %v1369_v10  ;;  %1230 = vmatpush3.bf16.msra.mxu0 %v1418_v9 }
   0xc   :  { %1233 = vmatpush3.bf16.msra.mxu1 %v1403_v4  ;;  %1150 = vmatprep.mubr.msk.f32.mxu1 %vm1368_vm1, %v1369_v10  ;;  %p1351_p4 = pnand %p1350_p3, %p1344_p0 }
   0xd   :  { %1234 = vmatprep.subr.bf16.mxu1 %v1367_v3  ;;  %1237 = vmatprep.subr.bf16.mxu0 %v1367_v3 }
  0x10   :  { %1236 = vmatpush3.bf16.msra.mxu1 %v1418_v9 }
  0x11   :  { %1243 = vmatprep.subr.bf16.mxu1 %v1367_v3 }
  0xd7   :  { %v1439_v11 = vpop.f32.mrb[0].mxu0 }
  0xd8   :  { %v1441_v12 = vpop.f32.mrb[1].mxu0 }
  0xde   :  { %v174_v13 = vpop.f32.mrb[0].mxu1 }
  0xdf   :  { %v178_v14 = vadd.f32 %v174_v13, %v1441_v12  ;;  %v1130_v15 = vpop.f32.mrb[1].mxu1 }
  0xe1   :  { %1279 = vtanh.f32 %v178_v14  ;;  %v1050_v17 = vmul.f32 -1.442695, %v178_v14 }
  0xe3   :  { %1281 = vpow2.f32 %v1050_v17 }
  0xeb   :  { %v1280_v16 = vpop.eup %1279 }
  0xec   :  { %188 = vrot.lane.b32.xlu0 %v1280_v16, %s1370_s0 }
  0xed   :  { %v1282_v18 = vpop.eup %1281 }
  0xee   :  { %v182_v19 = vadd.f32 1.0, %v1282_v18 }
  0xf0   :  { %1283 = vrcp.f32 %v182_v19 }
  0xfa   :  { %v1284_v20 = vpop.eup %1283 }
  0xfb   :  { %v186_v23 = vmul.f32 0.0, %v1284_v20 }
 0x15e   :  { %v189_v21 = vpop.permute.xlu0 %188 }
 0x15f   :  { %v191_v22 = vmul.f32 %v1284_v20, %v189_v21 }
 0x161   :  { %193 = vrot.lane.b32.xlu0 %v191_v22, %s1370_s0 }
 0x1d3   :  { %v194_v24 = vpop.permute.xlu0 %193 }
 0x1d4   :  { %v196_v25 = vadd.f32 %v194_v24, %v186_v23 }
 0x1d6   :  { %1285 = vtanh.f32 %v196_v25  ;;  %v290_v41 = vrot.slane %v196_v25, 6 }
 0x1e0   :  { %v1286_v26 = vpop.eup %1285 }
 0x1e1   :  { %199 = vrot.lane.b32.xlu1 %v1286_v26, %s1370_s0 }
 0x253   :  { %v200_v27 = vpop.permute.xlu1 %199 }
 0x254   :  { %v202_v28 = vmul.f32 %v1284_v20, %v200_v27 }
 0x256   :  { %204 = vrot.lane.b32.xlu1 %v202_v28, %s1371_s1 }
 0x2c8   :  { %v205_v29 = vpop.permute.xlu1 %204 }
 0x2c9   :  { %1140 = vmatmul.mubr.msk.f32.vlgmr.msra.gmra.mrb[2].mxu0 %vm104_vm2, %v205_v29 }
 0x2ca   :  { %1239 = vmatpush3.bf16.msra.mxu0 %v1403_v4  ;;  %1161 = vmatprep.mubr.msk.f32.mxu0 %vm1368_vm1, %v1369_v10 }
 0x2cb   :  { %1240 = vmatprep.subr.bf16.mxu0 %v1367_v3 }
 0x2ce   :  { %1242 = vmatpush3.bf16.msra.mxu0 %v1418_v9 }
 0x2cf   :  { %1249 = vmatprep.subr.bf16.mxu0 %v1367_v3 }
 0x39c   :  { %v274_v30 = vpop.f32.mrb[2].mxu0 }
 0x39d   :  { %v279_v31 = vrot.slane %v274_v30, 6  ;;  %v1141_v32 = vpop.f32.mrb[3].mxu0 }
 0x39f   :  { %v281_v33 = vadd.f32 %v279_v31, %v1441_v12 }
 0x3a1   :  { %1287 = vtanh.f32 %v281_v33  ;;  %v1052_v35 = vmul.f32 -1.442695, %v281_v33 }
 0x3a3   :  { %1289 = vpow2.f32 %v1052_v35 }
 0x3ab   :  { %v1288_v34 = vpop.eup %1287 }
 0x3ac   :  { %294 = vrot.lane.b32.xlu0 %v1288_v34, %s1370_s0 }
 0x3ad   :  { %v1290_v36 = vpop.eup %1289 }
 0x3ae   :  { %v285_v37 = vadd.f32 1.0, %v1290_v36 }
 0x3b0   :  { %1291 = vrcp.f32 %v285_v37 }
 0x3ba   :  { %v1292_v38 = vpop.eup %1291 }
 0x3bb   :  { %v292_v42 = vmul.f32 %v1292_v38, %v290_v41 }
 0x41e   :  { %v295_v39 = vpop.permute.xlu0 %294 }
 0x41f   :  { %v297_v40 = vmul.f32 %v1292_v38, %v295_v39 }
 0x421   :  { %299 = vrot.lane.b32.xlu1 %v297_v40, %s1370_s0 }
 0x493   :  { %v300_v43 = vpop.permute.xlu1 %299 }
 0x494   :  { %v302_v44 = vadd.f32 %v300_v43, %v292_v42 }
 0x496   :  { %1293 = vtanh.f32 %v302_v44  ;;  %v397_v61 = vrot.slane %v302_v44, 6 }
 0x4a0   :  { %v1294_v45 = vpop.eup %1293 }
 0x4a1   :  { %305 = vrot.lane.b32.xlu0 %v1294_v45, %s1370_s0 }
 0x513   :  { %v306_v46 = vpop.permute.xlu0 %305 }
 0x514   :  { %v308_v47 = vmul.f32 %v1292_v38, %v306_v46 }
 0x516   :  { %v310_v48 = vrot.slane %v308_v47, 2 }
 0x518   :  { %311 = vrot.lane.b32.xlu1 %v310_v48, %s1371_s1 }
 0x58a   :  { %v312_v49 = vpop.permute.xlu1 %311 }
 0x58b   :  { %1151 = vmatmul.mubr.msk.f32.vlgmr.msra.gmra.mrb[2].mxu1 %vm104_vm2, %v312_v49 }
 0x58c   :  { %1245 = vmatpush3.bf16.msra.mxu1 %v1403_v4  ;;  %1172 = vmatprep.mubr.msk.f32.mxu1 %vm1368_vm1, %v1369_v10 }
 0x58d   :  { %1246 = vmatprep.subr.bf16.mxu1 %v1367_v3 }
 0x590   :  { %1248 = vmatpush3.bf16.msra.mxu1 %v1418_v9 }
 0x591   :  { %1255 = vmatprep.subr.bf16.mxu1 %v1367_v3 }
 0x65e   :  { %v381_v50 = vpop.f32.mrb[2].mxu1 }
 0x65f   :  { %v386_v51 = vrot.slane %v381_v50, 4  ;;  %v1152_v52 = vpop.f32.mrb[3].mxu1 }
 0x661   :  { %v388_v53 = vadd.f32 %v386_v51, %v1441_v12 }
 0x663   :  { %1295 = vtanh.f32 %v388_v53  ;;  %v1054_v55 = vmul.f32 -1.442695, %v388_v53 }
 0x665   :  { %1297 = vpow2.f32 %v1054_v55 }
 0x66d   :  { %v1296_v54 = vpop.eup %1295 }
 0x66e   :  { %401 = vrot.lane.b32.xlu0 %v1296_v54, %s1370_s0 }
 0x66f   :  { %v1298_v56 = vpop.eup %1297 }
 0x670   :  { %v392_v57 = vadd.f32 1.0, %v1298_v56 }
 0x672   :  { %1299 = vrcp.f32 %v392_v57 }
 0x67c   :  { %v1300_v58 = vpop.eup %1299 }
 0x67d   :  { %v399_v62 = vmul.f32 %v1300_v58, %v397_v61 }
 0x6e0   :  { %v402_v59 = vpop.permute.xlu0 %401 }
 0x6e1   :  { %v404_v60 = vmul.f32 %v1300_v58, %v402_v59 }
 0x6e3   :  { %406 = vrot.lane.b32.xlu1 %v404_v60, %s1370_s0 }
 0x755   :  { %v407_v63 = vpop.permute.xlu1 %406 }
 0x756   :  { %v409_v0 = vadd.f32 %v407_v63, %v399_v62 }
 0x758   :  { %1301 = vtanh.f32 %v409_v0  ;;  %v504_v23 = vrot.slane %v409_v0, 6 }
 0x762   :  { %v1302_v1 = vpop.eup %1301 }
 0x763   :  { %412 = vrot.lane.b32.xlu0 %v1302_v1, %s1370_s0 }
 0x7d5   :  { %v413_v2 = vpop.permute.xlu0 %412 }
 0x7d6   :  { %v415_v5 = vmul.f32 %v1300_v58, %v413_v2 }
 0x7d8   :  { %v417_v6 = vrot.slane %v415_v5, 4 }
 0x7da   :  { %418 = vrot.lane.b32.xlu1 %v417_v6, %s1371_s1 }
 0x84c   :  { %v419_v7 = vpop.permute.xlu1 %418 }
 0x84d   :  { %1162 = vmatmul.mubr.msk.f32.vlgmr.msra.gmra.mrb[4].mxu0 %vm104_vm2, %v419_v7 }
 0x84e   :  { %1251 = vmatpush3.bf16.msra.mxu0 %v1403_v4  ;;  %1183 = vmatprep.mubr.msk.f32.mxu0 %vm1368_vm1, %v1369_v10 }
 0x84f   :  { %1252 = vmatprep.subr.bf16.mxu0 %v1367_v3 }
 0x852   :  { %1254 = vmatpush3.bf16.msra.mxu0 %v1418_v9 }
 0x853   :  { %1261 = vmatprep.subr.bf16.mxu0 %v1367_v3 }
 0x920   :  { %v488_v8 = vpop.f32.mrb[4].mxu0 }
 0x921   :  { %v493_v13 = vrot.slane %v488_v8, 2  ;;  %v1163_v14 = vpop.f32.mrb[5].mxu0 }
 0x923   :  { %v495_v15 = vadd.f32 %v493_v13, %v1441_v12 }
 0x925   :  { %1303 = vtanh.f32 %v495_v15  ;;  %v1056_v17 = vmul.f32 -1.442695, %v495_v15 }
 0x927   :  { %1305 = vpow2.f32 %v1056_v17 }
 0x92f   :  { %v1304_v16 = vpop.eup %1303 }
 0x930   :  { %508 = vrot.lane.b32.xlu0 %v1304_v16, %s1370_s0 }
 0x931   :  { %v1306_v18 = vpop.eup %1305 }
 0x932   :  { %v499_v19 = vadd.f32 1.0, %v1306_v18 }
 0x934   :  { %1307 = vrcp.f32 %v499_v19 }
 0x93e   :  { %v1308_v20 = vpop.eup %1307 }
 0x93f   :  { %v506_v24 = vmul.f32 %v1308_v20, %v504_v23 }
 0x9a2   :  { %v509_v21 = vpop.permute.xlu0 %508 }
 0x9a3   :  { %v511_v22 = vmul.f32 %v1308_v20, %v509_v21 }
 0x9a5   :  { %513 = vrot.lane.b32.xlu1 %v511_v22, %s1370_s0 }
 0xa17   :  { %v514_v25 = vpop.permute.xlu1 %513 }
 0xa18   :  { %v516_v26 = vadd.f32 %v514_v25, %v506_v24 }
 0xa1a   :  { %1309 = vtanh.f32 %v516_v26  ;;  %v608_v41 = vrot.slane %v516_v26, 6 }
 0xa24   :  { %v1310_v12 = vpop.eup %1309 }
 0xa25   :  { %519 = vrot.lane.b32.xlu0 %v1310_v12, %s1370_s0 }
 0xa97   :  { %v520_v27 = vpop.permute.xlu0 %519 }
 0xa98   :  { %v522_v28 = vmul.f32 %v1308_v20, %v520_v27 }
 0xa9a   :  { %v524_v29 = vrot.slane %v522_v28, 6 }
 0xa9c   :  { %525 = vrot.lane.b32.xlu1 %v524_v29, %s1371_s1 }
 0xb0e   :  { %v526_v30 = vpop.permute.xlu1 %525 }
 0xb0f   :  { %1173 = vmatmul.mubr.msk.f32.vlgmr.msra.gmra.mrb[4].mxu1 %vm104_vm2, %v526_v30 }
 0xb10   :  { %1257 = vmatpush3.bf16.msra.mxu1 %v1403_v4  ;;  %1194 = vmatprep.mubr.msk.f32.mxu1 %vm1368_vm1, %v1369_v10 }
 0xb11   :  { %1258 = vmatprep.subr.bf16.mxu1 %v1367_v3 }
 0xb14   :  { %1260 = vmatpush3.bf16.msra.mxu1 %v1418_v9 }
 0xb15   :  { %1267 = vmatprep.subr.bf16.mxu1 %v1367_v3 }
 0xbe2   :  { %v595_v31 = vpop.f32.mrb[4].mxu1 }
 0xbe3   :  { %v599_v32 = vadd.f32 %v1439_v11, %v595_v31  ;;  %v1174_v33 = vpop.f32.mrb[5].mxu1 }
 0xbe5   :  { %1311 = vtanh.f32 %v599_v32  ;;  %v1058_v35 = vmul.f32 -1.442695, %v599_v32 }
 0xbe7   :  { %1313 = vpow2.f32 %v1058_v35 }
 0xbef   :  { %v1312_v34 = vpop.eup %1311 }
 0xbf0   :  { %612 = vrot.lane.b32.xlu0 %v1312_v34, %s1370_s0 }
 0xbf1   :  { %v1314_v36 = vpop.eup %1313 }
 0xbf2   :  { %v603_v37 = vadd.f32 1.0, %v1314_v36 }
 0xbf4   :  { %1315 = vrcp.f32 %v603_v37 }
 0xbfe   :  { %v1316_v38 = vpop.eup %1315 }
 0xbff   :  { %v610_v42 = vmul.f32 %v1316_v38, %v608_v41 }
 0xc62   :  { %v613_v39 = vpop.permute.xlu0 %612 }
 0xc63   :  { %v615_v40 = vmul.f32 %v1316_v38, %v613_v39 }
 0xc65   :  { %617 = vrot.lane.b32.xlu1 %v615_v40, %s1370_s0 }
 0xcd7   :  { %v618_v43 = vpop.permute.xlu1 %617 }
 0xcd8   :  { %v620_v44 = vadd.f32 %v618_v43, %v610_v42  ;;  %v948_v42 = vld [vmem:[%s1552_s2 + $0x8] sm:$0xff]  ;;  %v949_v43 = vld [vmem:[%s1552_s2 + $0x10] sm:$0xff] }
 0xcda   :  { %1317 = vtanh.f32 %v620_v44 }
 0xce4   :  { %v1318_v45 = vpop.eup %1317 }
 0xce5   :  { %623 = vrot.lane.b32.xlu0 %v1318_v45, %s1370_s0  ;;  %v950_v45 = vld [vmem:[%s1552_s2 + $0x18] sm:$0xff] }
 0xd57   :  { %v624_v46 = vpop.permute.xlu0 %623 }
 0xd58   :  { %v626_v47 = vmul.f32 %v1316_v38, %v624_v46  ;;  %v1271_v46 = vpack.c.bf16 %v950_v45, %v949_v43 }
 0xd5a   :  { %628 = vrot.lane.b32.xlu1 %v626_v47, %s1371_s1 }
 0xdcc   :  { %v629_v48 = vpop.permute.xlu1 %628 }
 0xdcd   :  { %1184 = vmatmul.mubr.msk.f32.vlgmr.msra.gmra.mrb[6].mxu0 %vm104_vm2, %v629_v48 }
 0xdce   :  { %1263 = vmatpush3.bf16.msra.mxu0 %v1403_v4  ;;  %1205 = vmatprep.mubr.msk.f32.mxu0 %vm1368_vm1, %v1369_v10 }
 0xdcf   :  { %1264 = vmatprep.subr.bf16.mxu0 %v1367_v3 }
 0xdd2   :  { %1266 = vmatpush3.bf16.msra.mxu0 %v1418_v9  ;;  %v714_v9 = vrot.slane %v620_v44, 6 }
 0xea0   :  { %v698_v49 = vpop.f32.mrb[6].mxu0 }
 0xea1   :  { %v703_v50 = vrot.slane %v698_v49, 6  ;;  %v1185_v51 = vpop.f32.mrb[7].mxu0 }
 0xea3   :  { %v705_v52 = vadd.f32 %v1439_v11, %v703_v50 }
 0xea5   :  { %1319 = vtanh.f32 %v705_v52  ;;  %v1060_v54 = vmul.f32 -1.442695, %v705_v52  ;;  %v1065_v52 = vld [vmem:[%s1552_s2 + $0x20] ss:$0 sm:$0xff] }
 0xea7   :  { %1321 = vpow2.f32 %v1060_v54 }
 0xeaf   :  { %v1320_v53 = vpop.eup %1319 }
 0xeb0   :  { %718 = vrot.lane.b32.xlu0 %v1320_v53, %s1370_s0 }
 0xeb1   :  { %v1322_v55 = vpop.eup %1321 }
 0xeb2   :  { %v709_v4 = vadd.f32 1.0, %v1322_v55 }
 0xeb4   :  { %1323 = vrcp.f32 %v709_v4 }
 0xebe   :  { %v1324_v56 = vpop.eup %1323 }
 0xebf   :  { %v716_v59 = vmul.f32 %v1324_v56, %v714_v9 }
 0xf22   :  { %v719_v57 = vpop.permute.xlu0 %718 }
 0xf23   :  { %v721_v58 = vmul.f32 %v1324_v56, %v719_v57 }
 0xf25   :  { %723 = vrot.lane.b32.xlu1 %v721_v58, %s1370_s0 }
 0xf97   :  { %v724_v60 = vpop.permute.xlu1 %723 }
 0xf98   :  { %v726_v61 = vadd.f32 %v724_v60, %v716_v59 }
 0xf9a   :  { %1325 = vtanh.f32 %v726_v61 }
 0xfa4   :  { %v1326_v62 = vpop.eup %1325 }
 0xfa5   :  { %729 = vrot.lane.b32.xlu0 %v1326_v62, %s1370_s0 }
0x1017   :  { %v730_v63 = vpop.permute.xlu0 %729 }
0x1018   :  { %v732_v0 = vmul.f32 %v1324_v56, %v730_v63 }
0x101a   :  { %v734_v1 = vrot.slane %v732_v0, 2 }
0x101c   :  { %735 = vrot.lane.b32.xlu1 %v734_v1, %s1371_s1 }
0x108e   :  { %v736_v2 = vpop.permute.xlu1 %735 }
0x108f   :  { %1195 = vmatmul.mubr.msk.f32.vlgmr.msra.gmra.mrb[6].mxu1 %vm104_vm2, %v736_v2 }
0x1090   :  { %1216 = vmatprep.mubr.msk.f32.mxu1 %vm1368_vm1, %v1369_v10  ;;  %v821_v10 = vrot.slane %v726_v61, 6 }
0x1162   :  { %v805_v5 = vpop.f32.mrb[6].mxu1 }
0x1163   :  { %v810_v6 = vrot.slane %v805_v5, 4  ;;  %v1196_v7 = vpop.f32.mrb[7].mxu1 }
0x1165   :  { %v812_v8 = vadd.f32 %v1439_v11, %v810_v6 }
0x1167   :  { %1327 = vtanh.f32 %v812_v8  ;;  %v1062_v14 = vmul.f32 -1.442695, %v812_v8 }
0x1169   :  { %1329 = vpow2.f32 %v1062_v14 }
0x1171   :  { %v1328_v13 = vpop.eup %1327 }
0x1172   :  { %825 = vrot.lane.b32.xlu0 %v1328_v13, %s1370_s0 }
0x1173   :  { %v1330_v15 = vpop.eup %1329 }
0x1174   :  { %v816_v16 = vadd.f32 1.0, %v1330_v15 }
0x1176   :  { %1331 = vrcp.f32 %v816_v16 }
0x1180   :  { %v1332_v17 = vpop.eup %1331 }
0x1181   :  { %v823_v20 = vmul.f32 %v1332_v17, %v821_v10 }
0x11e4   :  { %v826_v18 = vpop.permute.xlu0 %825 }
0x11e5   :  { %v828_v19 = vmul.f32 %v1332_v17, %v826_v18 }
0x11e7   :  { %830 = vrot.lane.b32.xlu1 %v828_v19, %s1370_s0 }
0x1259   :  { %v831_v21 = vpop.permute.xlu1 %830 }
0x125a   :  { %v833_v22 = vadd.f32 %v831_v21, %v823_v20 }
0x125c   :  { %1333 = vtanh.f32 %v833_v22  ;;  %v928_v38 = vrot.slane %v833_v22, 6 }
0x1266   :  { %v1334_v23 = vpop.eup %1333 }
0x1267   :  { %836 = vrot.lane.b32.xlu0 %v1334_v23, %s1370_s0 }
0x12d9   :  { %v837_v24 = vpop.permute.xlu0 %836 }
0x12da   :  { %v839_v25 = vmul.f32 %v1332_v17, %v837_v24 }
0x12dc   :  { %v841_v26 = vrot.slane %v839_v25, 4 }
0x12de   :  { %842 = vrot.lane.b32.xlu1 %v841_v26, %s1371_s1 }
0x1350   :  { %v843_v12 = vpop.permute.xlu1 %842 }
0x1351   :  { %1206 = vmatmul.mubr.msk.f32.vlgmr.msra.gmra.mrb[8].mxu0 %vm104_vm2, %v843_v12 }
0x1424   :  { %v912_v27 = vpop.f32.mrb[8].mxu0 }
0x1425   :  { %v917_v28 = vrot.slane %v912_v27, 2  ;;  %v1207_v29 = vpop.f32.mrb[9].mxu0 }
0x1427   :  { %v919_v30 = vadd.f32 %v1439_v11, %v917_v28  ;;  %v947_v11 = vld [vmem:[%s1552_s2] sm:$0xff] }
0x1428   :  { %v1268_v44 = vpack.c.bf16 %v948_v42, %v947_v11 }
0x1429   :  { %1335 = vtanh.f32 %v919_v30  ;;  %v1064_v32 = vmul.f32 -1.442695, %v919_v30 }
0x142a   :  { %1269 = vmatpush3.bf16.msra.mxu1 %v1268_v44 }
0x142b   :  { %1337 = vpow2.f32 %v1064_v32  ;;  %1270 = vmatprep.subr.bf16.mxu1 %v1367_v3 }
0x142e   :  { %1272 = vmatpush3.bf16.msra.mxu1 %v1271_v46 }
0x1433   :  { %v1336_v31 = vpop.eup %1335 }
0x1434   :  { %932 = vrot.lane.b32.xlu0 %v1336_v31, %s1370_s0 }
0x1435   :  { %v1338_v33 = vpop.eup %1337 }
0x1436   :  { %v923_v34 = vadd.f32 1.0, %v1338_v33 }
0x1438   :  { %1339 = vrcp.f32 %v923_v34 }
0x1442   :  { %v1340_v35 = vpop.eup %1339 }
0x1443   :  { %v930_v39 = vmul.f32 %v1340_v35, %v928_v38 }
0x14a6   :  { %v933_v36 = vpop.permute.xlu0 %932 }
0x14a7   :  { %v935_v37 = vmul.f32 %v1340_v35, %v933_v36 }
0x14a9   :  { %937 = vrot.lane.b32.xlu1 %v935_v37, %s1370_s0 }
0x151b   :  { %v938_v40 = vpop.permute.xlu1 %937 }
0x151c   :  { %v940_v41 = vadd.f32 %v938_v40, %v930_v39 }
0x151e   :  { %1341 = vtanh.f32 %v940_v41 }
0x1528   :  { %v1342_v47 = vpop.eup %1341 }
0x1529   :  { %943 = vrot.lane.b32.xlu0 %v1342_v47, %s1370_s0 }
0x159b   :  { %v944_v48 = vpop.permute.xlu0 %943 }
0x159c   :  { %v946_v49 = vmul.f32 %v1340_v35, %v944_v48 }
0x159e   :  { %v957_v50 = vrot.slane %v946_v49, 6 }
0x15a0   :  { %958 = vrot.lane.b32.xlu1 %v957_v50, %s1371_s1 }
0x1612   :  { %v959_v51 = vpop.permute.xlu1 %958 }
0x1613   :  { %1217 = vmatmul.mubr.msk.f32.vlgmr.msra.gmra.mrb[8].mxu1 %vm104_vm2, %v959_v51 }
0x16e6   :  { %v1028_v53 = vpop.f32.mrb[8].mxu1 }
0x16e7   :  { %v1029_v3 = vadd.f32 %v1065_v52, %v1028_v53  ;;  %v1218_v54 = vpop.f32.mrb[9].mxu1 }
0x16e9   :  { %1033 = vst.msk [vmem:[#allocation2] sm:$0x3] %vm1032_vm3, %v1029_v3 }
0x16ea   :  { %1354 = shalt.err (!%p1351_p4)
}
0x16eb   :  { %s1355_s14 = scalar_lea.hbm %s1553_s3, 32 }
0x16ec   :  { %p1356_p5 = scmp.ne.s32.totalorder %s1553_s3, %s1355_s14  ;;  %p1359_p6 = scmp.lt.u32.totalorder %s1355_s14, %s1553_s3 }
0x16ee   :  { %p1361_p7 = pnand %p1359_p6, %p1356_p5 }
0x16f0   :  { %1364 = shalt.err (!%p1361_p7)
}
0x16f1   :  { %1043 = dma.vmem_to_hbm [thread:$0]  %s1041_s10, 32, %s1553_s3, [#allocation3]  }
0x16f2   :  { %1365 = dma.done.wait [#allocation3], 32  }
0x16f3   :  { %1366 = vsyncadd [#allocation3], 4294967264 }
0x16f4   :  { %1047 = vsyncpa [#allocation3], 1 }

</bundles_post_ra>
